<compile_context>
chip_gen: v6e
topology: v6e:2x2x1
jax: 0.10.0
libtpu: 0.0.40
codegen_flags: <defaults>
</compile_context>

<pallas_src>
import functools

import jax
import jax.numpy as jnp
from jax.experimental import pallas as pl
from jax.experimental.pallas import tpu as pltpu


def _cdiv(a, b):
    return -(-a // b)


def _round_up(v, m):
    return ((v + m - 1) // m) * m


def _sublane_multiple(dtype):
    # f32 -> 8, bf16 -> 16, int8/bool -> 32 (sub-32-bit dtypes pack sublanes).
    return max(8, 32 // jnp.dtype(dtype).itemsize)


def _vmem_capacity_bytes():
    """Per-chip VMEM capacity (64 MiB on v7x, 128 MiB on v5e/v6e)."""
    try:
        info = pltpu.get_tpu_info()
        cap = getattr(info, "vmem_capacity_bytes", None)
        if cap:
            return int(cap)
    except Exception:
        pass
    return 64 * 1024 * 1024  # conservative (v7x-sized) fallback


def _graph_pool_kernel(adj_ref, xk_ref, xi_ref, o_ref, acc_ref, *, compute_dtype):
    # adj_ref: (tm, tk) adjacency tile (0/1 values, any storage dtype)
    # xk_ref : (tk, tn) feature rows streamed over the reduction axis
    # xi_ref : (tm, tn) "self" feature rows for this output row tile
    # o_ref  : (tm, tn) output tile
    # acc_ref: (tm, tn) f32 accumulator scratch
    k = pl.program_id(2)

    @pl.when(k == 0)
    def _init():
        # Fold the "+ x[i]" self-add into the accumulator initialization.
        acc_ref[...] = xi_ref[...].astype(jnp.float32)

    # Cast 0/1 adjacency (exact) and the streamed features to the compute
    # dtype in VMEM; matmul on the MXU with f32 accumulation.
    adj_tile = adj_ref[...].astype(compute_dtype)
    xk_tile = xk_ref[...].astype(compute_dtype)
    acc_ref[...] += jnp.dot(adj_tile, xk_tile, preferred_element_type=jnp.float32)

    @pl.when(k == pl.num_programs(2) - 1)
    def _finalize():
        o_ref[...] = acc_ref[...].astype(o_ref.dtype)


def _choose_tiles(n, d, sub, adj_bytes, x_bytes, max_tile, ws_budget):
    """Pick (tm, tk, tn, num_i, num_j, num_k) under the per-chip VMEM budget."""

    def working_set(tm, tk, tn):
        return (2 * tm * tk * adj_bytes      # adj  (double-buffered)
                + 2 * tk * tn * x_bytes      # xk   (double-buffered)
                + 2 * tm * tn * x_bytes      # xi   (double-buffered)
                + 2 * tm * tn * x_bytes      # out  (double-buffered)
                + tm * tn * 4)               # f32 accumulator

    cap = max(max_tile, 128)
    while True:
        # Balanced row / reduction tiles under the current cap (pads by at
        # most sub-1 rows / 127 cols instead of a whole tile).
        num_i = _cdiv(n, cap)
        tm = _round_up(_cdiv(n, num_i), sub)
        num_k = _cdiv(n, cap)
        tk = _round_up(_cdiv(n, num_k), 128)

        # Feature axis: a single lane-dense tile if it fits, else the
        # smallest balanced split (every extra j-tile re-streams adj).
        num_j = 1
        while True:
            tn = _round_up(_cdiv(d, num_j), 128)
            if working_set(tm, tk, tn) <= ws_budget or tn == 128:
                break
            num_j += 1

        if working_set(tm, tk, tn) <= ws_budget or cap <= 256:
            break
        cap //= 2

    return tm, tk, tn, num_i, num_j, num_k


def graph_pool(x, adj, *, max_tile=1024, compute_dtype=None):
    """x: (N, D) features, adj: (N, N) 0/1 adjacency (int8/bool/bf16/f32).

    Returns (N, D) = adj @ x + x, computed with a tiled Pallas kernel.
    compute_dtype: optional MXU input dtype (e.g. jnp.bfloat16).  adj cast is
    exact for 0/1; x is rounded; accumulation stays float32.
    """
    n, d = x.shape
    assert adj.shape == (n, n), "adj must be (N, N)"
    assert max_tile >= 128 and max_tile % 128 == 0

    x_dtype = x.dtype
    if compute_dtype is None:
        compute_dtype = x_dtype
    compute_dtype = jnp.dtype(compute_dtype)

    adj_bytes = jnp.dtype(adj.dtype).itemsize
    x_bytes = jnp.dtype(x_dtype).itemsize
    sub = max(_sublane_multiple(adj.dtype), _sublane_multiple(x_dtype))

    # ---- per-chip VMEM budget ----------------------------------------------
    vmem_cap = _vmem_capacity_bytes()
    ws_budget = int(vmem_cap * 0.6)        # double-buffered working-set budget
    vmem_limit = int(vmem_cap * 0.8)       # scoped limit, headroom for scratch

    # ---- tile sizing ---------------------------------------------------------
    tm, tk, tn, num_i, num_j, num_k = _choose_tiles(
        n, d, sub, adj_bytes, x_bytes, max_tile, ws_budget)

    # v7x megacore: make sure the parallel axes have >= 2 program instances
    # so both TensorCores get work (harmless on single-TC v5e/v6e).
    if num_i * num_j == 1 and n > sub:
        num_i = 2
        tm = _round_up(_cdiv(n, 2), sub)

    n_rows = num_i * tm
    n_cols = num_k * tk
    d_pad = num_j * tn

    # ---- zero-padding to tile boundaries (zeros do not change adj@x + x) ----
    adj_p = adj
    if (n_rows, n_cols) != (n, n):
        adj_p = jnp.pad(adj, ((0, n_rows - n), (0, n_cols - n)))
    xk_p = x
    if (n_cols, d_pad) != (n, d):
        xk_p = jnp.pad(x, ((0, n_cols - n), (0, d_pad - d)))
    if n_rows == n_cols:
        xi_p = xk_p
    else:
        xi_p = x
        if (n_rows, d_pad) != (n, d):
            xi_p = jnp.pad(x, ((0, n_rows - n), (0, d_pad - d)))

    grid = (num_i, num_j, num_k)

    # Scheduler hint: adj is re-read once per feature tile; xk is re-streamed
    # once per row tile; xi/out read/written once.
    bytes_accessed = (num_j * n_rows * n_cols * adj_bytes
                      + num_i * n_cols * d_pad * x_bytes
                      + n_rows * d_pad * x_bytes
                      + n_rows * d_pad * x_bytes)
    flops = 2 * n_rows * n_cols * d_pad

    kernel = functools.partial(_graph_pool_kernel, compute_dtype=compute_dtype)

    out = pl.pallas_call(
        kernel,
        out_shape=jax.ShapeDtypeStruct((n_rows, d_pad), x_dtype),
        grid_spec=pltpu.PrefetchScalarGridSpec(
            num_scalar_prefetch=0,
            grid=grid,
            in_specs=[
                pl.BlockSpec((tm, tk), lambda i, j, k: (i, k)),  # adj tile
                pl.BlockSpec((tk, tn), lambda i, j, k: (k, j)),  # x (reduction)
                pl.BlockSpec((tm, tn), lambda i, j, k: (i, j)),  # x (self rows)
            ],
            out_specs=pl.BlockSpec((tm, tn), lambda i, j, k: (i, j)),
            scratch_shapes=[pltpu.VMEM((tm, tn), jnp.float32)],
        ),
        compiler_params=pltpu.CompilerParams(
            dimension_semantics=("parallel", "parallel", "arbitrary"),
            vmem_limit_bytes=vmem_limit,
        ),
        cost_estimate=pl.CostEstimate(
            flops=flops,
            transcendentals=0,
            bytes_accessed=int(bytes_accessed),
        ),
    )(adj_p, xk_p, xi_p)

    return out[:n, :d]


def _make_inputs(key, n, d):
    kx, ka = jax.random.split(key)
    x = jax.random.normal(kx, (n, d), dtype=jnp.float32)
    # Deterministic symmetric 0/1 adjacency, no self loops, stored as int8 so
    # the kernel streams 1 byte/elem from HBM (cast happens in-kernel).
    u = jax.random.uniform(ka, (n, n))
    a = u < 0.4
    adj_b = jnp.logical_or(a, a.T) & (~jnp.eye(n, dtype=bool))
    return x, adj_b.astype(jnp.int8)


if __name__ == "__main__":
    key = jax.random.PRNGKey(0)
    k1, k2 = jax.random.split(key)

    # ---- test 1: small shapes, single-tile grid, exact f32 path -------------
    N, D = 8, 32
    x, adj = _make_inputs(k1, N, D)
    out = jax.block_until_ready(graph_pool(x, adj))
    ref = adj.astype(jnp.float32) @ x + x
    assert out.shape == (N, D)
    assert jnp.allclose(out, ref, atol=1e-5, rtol=1e-5), "f32 mismatch (small)"

    # ---- test 2: non-aligned N/D, multi-tile grid (exercises k-accumulation,
    # balanced-padding and the parallel row split), exact f32 path ------------
    N2, D2 = 200, 176
    x2, adj2 = _make_inputs(k2, N2, D2)
    out2 = jax.block_until_ready(graph_pool(x2, adj2, max_tile=128))
    ref2 = adj2.astype(jnp.float32) @ x2 + x2
    assert out2.shape == (N2, D2)
    assert jnp.allclose(out2, ref2, atol=1e-4, rtol=1e-4), "f32 mismatch (tiled)"

    # ---- test 3: optional bf16 MXU-compute path (v6e/v7x fast path) ---------
    out3 = jax.block_until_ready(
        graph_pool(x2, adj2, max_tile=128, compute_dtype=jnp.bfloat16))
    x2_bf = x2.astype(jnp.bfloat16).astype(jnp.float32)
    ref3 = adj2.astype(jnp.float32) @ x2_bf + x2
    assert jnp.allclose(out3, ref3, atol=1e-2, rtol=1e-2), "bf16 mismatch"

    print("KERNEL_OK")
</pallas_src>

<mosaic_0001>
module attributes {stable_mosaic.version = 11 : i64} {
  func.func @_graph_pool_kernel(%arg0: i32, %arg1: i32, %arg2: i32, %arg3: memref<32x128xi8, #tpu.memory_space<vmem>>, %arg4: memref<128x128xf32, #tpu.memory_space<vmem>>, %arg5: memref<32x128xf32, #tpu.memory_space<vmem>>, %arg6: memref<32x128xf32, #tpu.memory_space<vmem>>, %arg7: memref<32x128xf32, #tpu.memory_space<vmem>>) attributes {dimension_semantics = [#tpu.dimension_semantics<parallel>, #tpu.dimension_semantics<parallel>, #tpu.dimension_semantics<arbitrary>], iteration_bounds = array<i64: 1, 1, 1>, scalar_prefetch = 0 : i64, scratch_operands = 1 : i64, tpu.core_type = #tpu.core_type<tc>, window_params = [{transform_indices = @transform_0, window_bounds = array<i64: 32, 128>}, {transform_indices = @transform_1, window_bounds = array<i64: 128, 128>}, {transform_indices = @transform_2, window_bounds = array<i64: 32, 128>}, {transform_indices = @transform_3, window_bounds = array<i64: 32, 128>}]} {
    %c0_i32 = arith.constant 0 : i32
    %0 = arith.cmpi eq, %arg2, %c0_i32 : i32
    %1 = arith.extui %0 : i1 to i32
    %c0_i32_0 = arith.constant 0 : i32
    %2 = arith.cmpi ne, %1, %c0_i32_0 : i32
    scf.if %2 {
      %c0_10 = arith.constant 0 : index
      %c0_11 = arith.constant 0 : index
      %13 = vector.load %arg5[%c0_10, %c0_11] : memref<32x128xf32, #tpu.memory_space<vmem>>, vector<32x128xf32>
      %c0_12 = arith.constant 0 : index
      %c0_13 = arith.constant 0 : index
      %14 = vector.load %arg7[%c0_12, %c0_13] : memref<32x128xf32, #tpu.memory_space<vmem>>, vector<32x128xf32>
      tpu.vector_store %arg7[%c0_12, %c0_13], %13 {strides = array<i32>} : memref<32x128xf32, #tpu.memory_space<vmem>>, vector<32x128xf32>,
    } else {
    }
    %c0 = arith.constant 0 : index
    %c0_1 = arith.constant 0 : index
    %3 = vector.load %arg3[%c0, %c0_1] : memref<32x128xi8, #tpu.memory_space<vmem>>, vector<32x128xi8>
    %4 = arith.sitofp %3 : vector<32x128xi8> to vector<32x128xf32>
    %c0_2 = arith.constant 0 : index
    %c0_3 = arith.constant 0 : index
    %5 = vector.load %arg4[%c0_2, %c0_3] : memref<128x128xf32, #tpu.memory_space<vmem>>, vector<128x128xf32>
    %c0_4 = arith.constant 0 : index
    %c0_5 = arith.constant 0 : index
    %6 = vector.load %arg7[%c0_4, %c0_5] : memref<32x128xf32, #tpu.memory_space<vmem>>, vector<32x128xf32>
    %cst = arith.constant dense<0.000000e+00> : vector<32x128xf32>
    %7 = tpu.matmul %4, %5, %cst {dimension_numbers = #tpu.dot_dimension_numbers<[1], [0], [0], [1], [0, 0, 1, 1], [], []>} : vector<32x128xf32>, vector<128x128xf32>, vector<32x128xf32> -> vector<32x128xf32>
    %8 = arith.addf %6, %7 : vector<32x128xf32>
    %c0_6 = arith.constant 0 : index
    %c0_7 = arith.constant 0 : index
    %9 = vector.load %arg7[%c0_6, %c0_7] : memref<32x128xf32, #tpu.memory_space<vmem>>, vector<32x128xf32>
    tpu.vector_store %arg7[%c0_6, %c0_7], %8 {strides = array<i32>} : memref<32x128xf32, #tpu.memory_space<vmem>>, vector<32x128xf32>,
    %c0_i32_8 = arith.constant 0 : i32
    %10 = arith.cmpi eq, %arg2, %c0_i32_8 : i32
    %11 = arith.extui %10 : i1 to i32
    %c0_i32_9 = arith.constant 0 : i32
    %12 = arith.cmpi ne, %11, %c0_i32_9 : i32
    scf.if %12 {
      %c0_10 = arith.constant 0 : index
      %c0_11 = arith.constant 0 : index
      %13 = vector.load %arg7[%c0_10, %c0_11] : memref<32x128xf32, #tpu.memory_space<vmem>>, vector<32x128xf32>
      %c0_12 = arith.constant 0 : index
      %c0_13 = arith.constant 0 : index
      %14 = vector.load %arg6[%c0_12, %c0_13] : memref<32x128xf32, #tpu.memory_space<vmem>>, vector<32x128xf32>
      tpu.vector_store %arg6[%c0_12, %c0_13], %13 {strides = array<i32>} : memref<32x128xf32, #tpu.memory_space<vmem>>, vector<32x128xf32>,
    } else {
    }
    return
  }
  func.func @transform_0(%arg0: i32, %arg1: i32, %arg2: i32) -> (i32, i32) {
    %c0_i32 = arith.constant 0 : i32
    return %arg0, %arg2 : i32, i32
  }
  func.func @transform_1(%arg0: i32, %arg1: i32, %arg2: i32) -> (i32, i32) {
    %c0_i32 = arith.constant 0 : i32
    return %arg2, %arg1 : i32, i32
  }
  func.func @transform_2(%arg0: i32, %arg1: i32, %arg2: i32) -> (i32, i32) {
    %c0_i32 = arith.constant 0 : i32
    return %arg0, %arg1 : i32, i32
  }
  func.func @transform_3(%arg0: i32, %arg1: i32, %arg2: i32) -> (i32, i32) {
    %c0_i32 = arith.constant 0 : i32
    return %arg0, %arg1 : i32, i32
  }
}

</mosaic_0001>

<bundles_post_ra>
// kernel: tpu_custom_call.1
= control target key start
LH: loop header
LB: loop body
LE: loop exit
PB: predicated region body
PF: predicated region fallthrough
CT: control target
= control target key end

     0   :  { %8 = vsyncpa [#allocation4], 0  ;;  %s446_s0 = inlined_call_operand.hbm [shape: s8[32,128], index: 0, kind: input, shape index: {}]   ;;  %s447_s1 = inlined_call_operand.hbm [shape: f32[128,128], index: 1, kind: input, shape index: {}]   ;;  %s448_s2 = inlined_call_operand.hbm [shape: f32[32,128], index: 2, kind: input, shape index: {}]   ;;  %s449_s3 = inlined_call_operand.hbm [shape: f32[32,128], index: 3, kind: output, shape index: {}]  }
   0x1   :  { %9 = vsyncpa [#allocation7], 0 }
   0x2   :  { %10 = vsyncpa [#allocation5], 0  ;;  %s399_s12 = smov [#allocation6]  }
   0x3   :  { %s26_s13 = sshll.u32 %s399_s12, 4  ;;  %s27_s13 = int_to_ptr.vmem [resolvable:$true] %s26_s13 }
   0x4   :  { %s321_s14 = scalar_lea.vmem %s27_s13, 2048  ;;  %p326_p1 = scmp.lt.s32.totalorder %s27_s13, %s27_s13 }
   0x5   :  { %p322_p0 = scmp.ne.s32.totalorder %s27_s13, %s321_s14  ;;  %p327_p2 = scmp.lt.s32.totalorder %s321_s14, %s321_s14 }
   0x7   :  { %p328_p3 = por %p327_p2, %p326_p1 }
   0x9   :  { %p329_p4 = pnand %p328_p3, %p322_p0 }
   0xb   :  { %332 = shalt.err (!%p329_p4)
}
   0xc   :  { %s400_s15 = smov 128   ;;  %s401_s16 = smov 8  }
   0xd   :  { %32 = dma.hbm_to_vmem [thread:$0]  %s447_s1, 2048, %s27_s13, [#allocation7], %s400_s15, %s400_s15, %s401_s16  }
   0xe   :  { %s402_s19 = smov [#allocation3]   ;;  %s403_s21 = smov [#allocation8]  }
   0xf   :  { %s17_s20 = sshll.u32 %s402_s19, 4  ;;  %s38_s22 = sshll.u32 %s403_s21, 4  ;;  %s18_s20 = int_to_ptr.vmem [resolvable:$true] %s17_s20  ;;  %s39_s22 = int_to_ptr.vmem [resolvable:$true] %s38_s22 }
  0x10   :  { %s341_s23 = scalar_lea.vmem %s18_s20, 128  ;;  %p346_p6 = scmp.lt.s32.totalorder %s18_s20, %s18_s20 }
  0x11   :  { %p342_p5 = scmp.ne.s32.totalorder %s18_s20, %s341_s23  ;;  %p347_p7 = scmp.lt.s32.totalorder %s341_s23, %s341_s23 }
  0x13   :  { %p348_p8 = por %p347_p7, %p346_p6 }
  0x15   :  { %p349_p9 = pnand %p348_p8, %p342_p5 }
  0x17   :  { %352 = shalt.err (!%p349_p9)
}
  0x18   :  { %20 = dma.hbm_to_vmem [thread:$0]  %s446_s0, 128, %s18_s20, [#allocation4]  }
  0x19   :  { %s361_s26 = scalar_lea.vmem %s39_s22, 512  ;;  %p366_p11 = scmp.lt.s32.totalorder %s39_s22, %s39_s22 }
  0x1a   :  { %p362_p10 = scmp.ne.s32.totalorder %s39_s22, %s361_s26  ;;  %p367_p12 = scmp.lt.s32.totalorder %s361_s26, %s361_s26 }
  0x1c   :  { %p368_p13 = por %p367_p12, %p366_p11 }
  0x1e   :  { %p369_p0 = pnand %p368_p13, %p362_p10 }
  0x20   :  { %372 = shalt.err (!%p369_p0)
}
  0x21   :  { %44 = dma.hbm_to_vmem [thread:$0]  %s448_s2, 512, %s39_s22, [#allocation7], %s400_s15, %s400_s15, %s401_s16  }
  0x22   :  { %393 = dma.done.wait [#allocation4], 128  }
  0x23   :  { %394 = vsyncadd [#allocation4], 4294967168 }
  0x24   :  { %395 = dma.done.wait [#allocation7], 2560  }
  0x25   :  { %396 = vsyncadd [#allocation7], 4294964736  ;;  %v90_v0 = vld [vmem:[#allocation6 + $0x78] sm:$0xff]  ;;  %v89_v1 = vld [vmem:[#allocation6 + $0x70] sm:$0xff]  ;;  %s404_s0 = smov [#allocation9]  }
  0x26   :  { %237 = vmatprep.subr.mxu0 %v90_v0  ;;  %275 = vmatprep.subr.mxu1 %v90_v0  ;;  %v88_v2 = vld [vmem:[#allocation6 + $0x68] sm:$0xff]  ;;  %v87_v3 = vld [vmem:[#allocation6 + $0x60] sm:$0xff]  ;;  %v86_v4 = vld [vmem:[#allocation6 + $0x58] sm:$0xff]  ;;  %s204_s2 = sshll.u32 %s404_s0, 4  ;;  %s205_s2 = int_to_ptr.vmem [resolvable:$true] %s204_s2 }
  0x27   :  { %238 = vmatpush3.msra.mxu0 %v90_v0  ;;  %291 = vmatpush3.msra.mxu1 %v90_v0  ;;  %v85_v5 = vld [vmem:[#allocation6 + $0x50] sm:$0xff]  ;;  %v84_v6 = vld [vmem:[#allocation6 + $0x48] sm:$0xff]  ;;  %v83_v7 = vld [vmem:[#allocation6 + $0x40] sm:$0xff]  ;;  %s373_s28 = scalar_lea.vmem %s205_s2, 512  ;;  %p378_p2 = scmp.lt.s32.totalorder %s205_s2, %s205_s2 }
  0x28   :  { %239 = vmatprep.subr.mxu0 %v89_v1  ;;  %276 = vmatprep.subr.mxu1 %v89_v1  ;;  %v82_v8 = vld [vmem:[#allocation6 + $0x38] sm:$0xff]  ;;  %v81_v9 = vld [vmem:[#allocation6 + $0x30] sm:$0xff]  ;;  %v80_v10 = vld [vmem:[#allocation6 + $0x28] sm:$0xff]  ;;  %p374_p1 = scmp.ne.s32.totalorder %s205_s2, %s373_s28  ;;  %p379_p3 = scmp.lt.s32.totalorder %s373_s28, %s373_s28 }
  0x29   :  { %240 = vmatpush3.msra.mxu0 %v89_v1  ;;  %292 = vmatpush3.msra.mxu1 %v89_v1  ;;  %v79_v11 = vld [vmem:[#allocation6 + $0x20] sm:$0xff]  ;;  %v78_v12 = vld [vmem:[#allocation6 + $0x18] sm:$0xff]  ;;  %v77_v14 = vld [vmem:[#allocation6 + $0x10] sm:$0xff] }
  0x2a   :  { %241 = vmatprep.subr.mxu0 %v88_v2  ;;  %277 = vmatprep.subr.mxu1 %v88_v2  ;;  %v66_v13 = vld [vmem:[#allocation3] sm:$0xff]  ;;  %v76_v17 = vld [vmem:[#allocation6 + $0x8] sm:$0xff]  ;;  %v75_v20 = vld [vmem:[#allocation6] sm:$0xff]  ;;  %p380_p4 = por %p379_p3, %p378_p2 }
  0x2b   :  { %242 = vmatpush3.msra.mxu0 %v88_v2  ;;  %293 = vmatpush3.msra.mxu1 %v88_v2  ;;  %v67_v15 = vunpack.c.0.s8 %v66_v13  ;;  %v69_v16 = vunpack.c.2.s8 %v66_v13  ;;  %v68_v18 = vunpack.c.1.s8 %v66_v13  ;;  %v70_v19 = vunpack.c.3.s8 %v66_v13  ;;  %v59_v25 = vld [vmem:[#allocation8 + $0x8] sm:$0xff]  ;;  %v61_v26 = vld [vmem:[#allocation8 + $0x18] sm:$0xff]  ;;  %v58_v29 = vld [vmem:[#allocation8] sm:$0xff] }
  0x2c   :  { %243 = vmatprep.subr.mxu0 %v87_v3  ;;  %278 = vmatprep.subr.mxu1 %v87_v3  ;;  %v60_v30 = vld [vmem:[#allocation8 + $0x10] sm:$0xff]  ;;  %p381_p5 = pnand %p380_p4, %p374_p1 }
  0x2d   :  { %244 = vmatpush3.msra.mxu0 %v87_v3  ;;  %294 = vmatpush3.msra.mxu1 %v87_v3  ;;  %v71_v21 = vcvt.s32.f32 %v67_v15  ;;  %v73_v22 = vcvt.s32.f32 %v69_v16  ;;  %v72_v23 = vcvt.s32.f32 %v68_v18  ;;  %v74_v24 = vcvt.s32.f32 %v70_v19 }
  0x2e   :  { %245 = vmatprep.subr.mxu0 %v86_v4  ;;  %279 = vmatprep.subr.mxu1 %v86_v4 }
  0x2f   :  { %246 = vmatpush3.msra.mxu0 %v86_v4  ;;  %295 = vmatpush3.msra.mxu1 %v86_v4 }
  0x30   :  { %247 = vmatprep.subr.mxu0 %v85_v5  ;;  %280 = vmatprep.subr.mxu1 %v85_v5 }
  0x31   :  { %248 = vmatpush3.msra.mxu0 %v85_v5  ;;  %296 = vmatpush3.msra.mxu1 %v85_v5 }
  0x32   :  { %249 = vmatprep.subr.mxu0 %v84_v6  ;;  %281 = vmatprep.subr.mxu1 %v84_v6 }
  0x33   :  { %250 = vmatpush3.msra.mxu0 %v84_v6  ;;  %297 = vmatpush3.msra.mxu1 %v84_v6 }
  0x34   :  { %251 = vmatprep.subr.mxu0 %v83_v7  ;;  %282 = vmatprep.subr.mxu1 %v83_v7 }
  0x35   :  { %252 = vmatpush3.msra.mxu0 %v83_v7  ;;  %298 = vmatpush3.msra.mxu1 %v83_v7 }
  0x36   :  { %253 = vmatprep.subr.mxu0 %v82_v8  ;;  %283 = vmatprep.subr.mxu1 %v82_v8 }
  0x37   :  { %254 = vmatpush3.msra.mxu0 %v82_v8  ;;  %299 = vmatpush3.msra.mxu1 %v82_v8 }
  0x38   :  { %255 = vmatprep.subr.mxu0 %v81_v9  ;;  %284 = vmatprep.subr.mxu1 %v81_v9 }
  0x39   :  { %256 = vmatpush3.msra.mxu0 %v81_v9  ;;  %300 = vmatpush3.msra.mxu1 %v81_v9 }
  0x3a   :  { %257 = vmatprep.subr.mxu0 %v80_v10  ;;  %285 = vmatprep.subr.mxu1 %v80_v10 }
  0x3b   :  { %258 = vmatpush3.msra.mxu0 %v80_v10  ;;  %301 = vmatpush3.msra.mxu1 %v80_v10 }
  0x3c   :  { %259 = vmatprep.subr.mxu0 %v79_v11  ;;  %286 = vmatprep.subr.mxu1 %v79_v11 }
  0x3d   :  { %260 = vmatpush3.msra.mxu0 %v79_v11  ;;  %302 = vmatpush3.msra.mxu1 %v79_v11 }
  0x3e   :  { %261 = vmatprep.subr.mxu0 %v78_v12  ;;  %287 = vmatprep.subr.mxu1 %v78_v12 }
  0x3f   :  { %262 = vmatpush3.msra.mxu0 %v78_v12  ;;  %303 = vmatpush3.msra.mxu1 %v78_v12 }
  0x40   :  { %263 = vmatprep.subr.mxu0 %v77_v14  ;;  %288 = vmatprep.subr.mxu1 %v77_v14 }
  0x41   :  { %264 = vmatpush3.msra.mxu0 %v77_v14  ;;  %304 = vmatpush3.msra.mxu1 %v77_v14 }
  0x42   :  { %265 = vmatprep.subr.mxu0 %v76_v17  ;;  %289 = vmatprep.subr.mxu1 %v76_v17 }
  0x43   :  { %266 = vmatpush3.msra.mxu0 %v76_v17  ;;  %305 = vmatpush3.msra.mxu1 %v76_v17 }
  0x44   :  { %267 = vmatprep.subr.mxu0 %v75_v20  ;;  %290 = vmatprep.subr.mxu1 %v75_v20 }
  0x45   :  { %268 = vmatpush3.msra.mxu0 %v75_v20  ;;  %306 = vmatpush3.msra.mxu1 %v75_v20 }
  0x46   :  { %269 = vmatprep.mubr.f32.mxu0 %v71_v21  ;;  %272 = vmatprep.mubr.f32.mxu1 %v73_v22 }
  0x47   :  { %270 = vmatmul.mubr.f32.vlgmr.msra.gmra.mxu0 %v72_v23  ;;  %273 = vmatmul.mubr.f32.vlgmr.msra.gmra.mxu1 %v74_v24 }
 0x107   :  { %v271_v27 = vpop.f32.mrf.mxu0  ;;  %v274_v28 = vpop.f32.mrf.mxu1 }
 0x108   :  { %v181_v31 = vadd.f32 %v271_v27, %v59_v25  ;;  %v183_v32 = vadd.f32 %v274_v28, %v61_v26 }
 0x109   :  { %v161_v33 = vpop.f32.mrf.mxu0  ;;  %v171_v34 = vpop.f32.mrf.mxu1 }
 0x10a   :  { %196 = vst [vmem:[#allocation9 + $0x8] sm:$0xff] %v181_v31  ;;  %198 = vst [vmem:[#allocation9 + $0x18] sm:$0xff] %v183_v32  ;;  %v180_v35 = vadd.f32 %v161_v33, %v58_v29  ;;  %v182_v36 = vadd.f32 %v171_v34, %v60_v30 }
 0x10c   :  { %195 = vst [vmem:[#allocation9] sm:$0xff] %v180_v35  ;;  %197 = vst [vmem:[#allocation9 + $0x10] sm:$0xff] %v182_v36 }
 0x10d   :  { %384 = shalt.err (!%p381_p5)
}
 0x10e   :  { %210 = dma.vmem_to_hbm [thread:$0]  %s205_s2, 512, %s449_s3, [#allocation5], %s400_s15, %s400_s15, %s401_s16  }
 0x10f   :  { %397 = dma.done.wait [#allocation5], 512  }
 0x110   :  { %398 = vsyncadd [#allocation5], 4294966784 }
 0x111   :  { %214 = vsyncpa [#allocation4], 1 }
 0x112   :  { %215 = vsyncpa [#allocation7], 1 }
 0x113   :  { %216 = vsyncpa [#allocation5], 1 }

</bundles_post_ra>
